<compile_context>
chip_gen: v7x
topology: tpu7x:2x2x1
jax: 0.10.0
libtpu: 0.0.40
codegen_flags: <defaults>
</compile_context>

<pallas_src>
import functools
import math

import jax
import jax.numpy as jnp
from jax.experimental import pallas as pl
from jax.experimental.pallas import tpu as pltpu


def _mixed_loss_kernel(x_ref, t_ref, pc_ref, gc_ref, o_ref,
                       m_ref, s_ref, d_ref, ts_ref, accv_ref,
                       *, n_rows, n_coord, w1, w2):
    """One (row-tile, col-tile) grid step of MixedLoss.

    x_ref / t_ref : (TR, TL) logits / target-probability tiles
    pc_ref/gc_ref : (1, N*C*3) flattened coords (resident, read once)
    o_ref         : (1, 1) scalar mixed loss (written on the final step)
    m/s/d/ts      : (TR, 1) online-softmax-CE running state (per row tile)
    accv_ref      : (TR, 1) per-sublane CE-loss accumulator (across row tiles)
    """
    r = pl.program_id(0)
    c = pl.program_id(1)
    last_r = pl.num_programs(0) - 1
    last_c = pl.num_programs(1) - 1

    # One-time init of the cross-row-tile loss accumulator.
    @pl.when((r == 0) & (c == 0))
    def _():
        accv_ref[...] = jnp.zeros_like(accv_ref)

    # Per-row-tile init of the online softmax-cross-entropy state.
    @pl.when(c == 0)
    def _():
        m_ref[...] = jnp.full(m_ref.shape, -jnp.inf, m_ref.dtype)
        s_ref[...] = jnp.zeros_like(s_ref)
        d_ref[...] = jnp.zeros_like(d_ref)
        ts_ref[...] = jnp.zeros_like(ts_ref)

    x = x_ref[...]                                      # (TR, TL)
    t = t_ref[...]                                      # (TR, TL)

    m_prev = m_ref[...]
    m_new = jnp.maximum(m_prev, jnp.max(x, axis=-1, keepdims=True))
    s_ref[...] = (s_ref[...] * jnp.exp(m_prev - m_new)
                  + jnp.sum(jnp.exp(x - m_new), axis=-1, keepdims=True))
    d_ref[...] = d_ref[...] + jnp.sum(t * x, axis=-1, keepdims=True)
    ts_ref[...] = ts_ref[...] + jnp.sum(t, axis=-1, keepdims=True)
    m_ref[...] = m_new

    # Row tile finished: fold per-row CE losses into the accumulator.
    #   sum(-t * (x - lse)) = lse * sum(t) - sum(t * x)
    @pl.when(c == last_c)
    def _():
        lse = m_ref[...] + jnp.log(s_ref[...])
        accv_ref[...] = accv_ref[...] + (lse * ts_ref[...] - d_ref[...])

    # Final grid step: add the coordinate L1 term and emit the mixed loss.
    @pl.when((r == last_r) & (c == last_c))
    def _():
        hm_sum = jnp.sum(accv_ref[...], axis=(0, 1), keepdims=True)      # (1,1)
        l1_sum = jnp.sum(jnp.abs(pc_ref[...] - gc_ref[...]),
                         axis=(0, 1), keepdims=True)                     # (1,1)
        o_ref[...] = (w1 / n_rows) * hm_sum + (w2 / n_coord) * l1_sum


def mixed_loss(inputs, targets, heatmap_weight=0.5):
    """Pallas TPU MixedLoss.

    inputs / targets: dicts {'heatmap': (N, C, X, Y, Z), 'coord': (N, C, 3)}.
    Returns a scalar float32 loss.
    """
    pred_hm, pred_c = inputs["heatmap"], inputs["coord"]
    gt_hm, gt_c = targets["heatmap"], targets["coord"]

    w1 = float(heatmap_weight)
    w2 = 1.0 - w1

    N, C = pred_hm.shape[:2]
    R = N * C
    L = math.prod(pred_hm.shape[2:])

    x = pred_hm.reshape(R, L).astype(jnp.float32)
    t = gt_hm.reshape(R, L).astype(jnp.float32)

    # Sublane (row) tile: multiple of 8 when possible. Extra rows are padded
    # with zeros; a zero target row contributes exactly 0 to the CE sum.
    TR = 8 if R >= 8 else R
    R_pad = ((R + TR - 1) // TR) * TR
    if R_pad != R:
        x = jnp.pad(x, ((0, R_pad - R), (0, 0)))
        t = jnp.pad(t, ((0, R_pad - R), (0, 0)))

    # Lane (column) tile: largest divisor of L that is a multiple of 128 and
    # <= 2048, so tiles are lane-dense and the softmax axis is never padded
    # (padding it would corrupt the normalizer). Fallback: one full-row tile.
    MAX_TL = 2048
    TL = L
    if L > MAX_TL:
        for cand in range(MAX_TL, 127, -128):
            if L % cand == 0:
                TL = cand
                break

    pc = pred_c.reshape(1, -1).astype(jnp.float32)
    gc = gt_c.reshape(1, -1).astype(jnp.float32)
    n_coord = pc.shape[1]

    grid = (R_pad // TR, L // TL)
    kernel = functools.partial(_mixed_loss_kernel,
                               n_rows=float(R), n_coord=float(n_coord),
                               w1=w1, w2=w2)

    out = pl.pallas_call(
        kernel,
        out_shape=jax.ShapeDtypeStruct((1, 1), jnp.float32),
        grid_spec=pltpu.PrefetchScalarGridSpec(
            num_scalar_prefetch=0,
            grid=grid,
            in_specs=[
                pl.BlockSpec((TR, TL), lambda r, c: (r, c)),       # logits
                pl.BlockSpec((TR, TL), lambda r, c: (r, c)),       # targets
                pl.BlockSpec((1, n_coord), lambda r, c: (0, 0)),   # pred coord
                pl.BlockSpec((1, n_coord), lambda r, c: (0, 0)),   # gt coord
            ],
            out_specs=pl.BlockSpec((1, 1), lambda r, c: (0, 0)),
            scratch_shapes=[
                pltpu.VMEM((TR, 1), jnp.float32),   # running row max
                pltpu.VMEM((TR, 1), jnp.float32),   # running row sum-exp
                pltpu.VMEM((TR, 1), jnp.float32),   # running sum(t * x)
                pltpu.VMEM((TR, 1), jnp.float32),   # running sum(t)
                pltpu.VMEM((TR, 1), jnp.float32),   # cross-row-tile CE losses
            ],
        ),
        compiler_params=pltpu.CompilerParams(
            dimension_semantics=("arbitrary", "arbitrary")),
    )(x, t, pc, gc)
    return out[0, 0]


def ref_mixed_loss(inputs, targets, heatmap_weight=0.5):
    """Pure-JAX reference (same math as the PyTorch module)."""
    pred_hm, pred_c = inputs["heatmap"], inputs["coord"]
    gt_hm, gt_c = targets["heatmap"], targets["coord"]
    w1 = heatmap_weight
    w2 = 1.0 - w1
    N, C = pred_hm.shape[:2]
    x = pred_hm.reshape(N * C, -1)
    t = gt_hm.reshape(N * C, -1)
    lsm = jax.nn.log_softmax(x, axis=-1)
    hm_loss = jnp.mean(jnp.sum(-t * lsm, axis=-1))
    l1_loss = jnp.mean(jnp.abs(pred_c - gt_c))
    return w1 * hm_loss + w2 * l1_loss


if __name__ == "__main__":
    N, C, X, Y, Z = 2, 4, 16, 16, 16

    key = jax.random.PRNGKey(0)
    k1, k2, k3, k4 = jax.random.split(key, 4)

    pred_hm = jax.random.normal(k1, (N, C, X, Y, Z), jnp.float32)
    gt_hm = jax.nn.softmax(
        jax.random.normal(k2, (N, C, X * Y * Z), jnp.float32), axis=-1
    ).reshape(N, C, X, Y, Z)
    pred_c = jax.random.normal(k3, (N, C, 3), jnp.float32)
    gt_c = jax.random.normal(k4, (N, C, 3), jnp.float32)

    inputs = {"heatmap": pred_hm, "coord": pred_c}
    targets = {"heatmap": gt_hm, "coord": gt_c}

    out = jax.block_until_ready(mixed_loss(inputs, targets, heatmap_weight=0.5))
    ref = jax.block_until_ready(ref_mixed_loss(inputs, targets, 0.5))

    err = abs(float(out) - float(ref))
    assert err < 1e-3, (
        f"mismatch vs reference: pallas={float(out)} ref={float(ref)} err={err}")
    print("KERNEL_OK")
</pallas_src>

<mosaic_0001>
module attributes {stable_mosaic.version = 11 : i64} {
  func.func @_mixed_loss_kernel(%arg0: i32, %arg1: i32, %arg2: memref<8x2048xf32, #tpu.memory_space<vmem>>, %arg3: memref<8x2048xf32, #tpu.memory_space<vmem>>, %arg4: memref<1x24xf32, #tpu.memory_space<vmem>>, %arg5: memref<1x24xf32, #tpu.memory_space<vmem>>, %arg6: memref<1x1xf32, #tpu.memory_space<vmem>>, %arg7: memref<8x1xf32, #tpu.memory_space<vmem>>, %arg8: memref<8x1xf32, #tpu.memory_space<vmem>>, %arg9: memref<8x1xf32, #tpu.memory_space<vmem>>, %arg10: memref<8x1xf32, #tpu.memory_space<vmem>>, %arg11: memref<8x1xf32, #tpu.memory_space<vmem>>) attributes {dimension_semantics = [#tpu.dimension_semantics<arbitrary>, #tpu.dimension_semantics<arbitrary>], iteration_bounds = array<i64: 1, 2>, scalar_prefetch = 0 : i64, scratch_operands = 5 : i64, tpu.core_type = #tpu.core_type<tc>, window_params = [{transform_indices = @transform_0, window_bounds = array<i64: 8, 2048>}, {transform_indices = @transform_1, window_bounds = array<i64: 8, 2048>}, {pipeline_mode = #tpu.pipeline_mode<synchronous>, transform_indices = @transform_2, window_bounds = array<i64: 1, 24>}, {pipeline_mode = #tpu.pipeline_mode<synchronous>, transform_indices = @transform_3, window_bounds = array<i64: 1, 24>}, {pipeline_mode = #tpu.pipeline_mode<synchronous>, transform_indices = @transform_4, window_bounds = array<i64: 1, 1>}]} {
    %c0_i32 = arith.constant 0 : i32
    %0 = arith.cmpi eq, %arg0, %c0_i32 : i32
    %c0_i32_0 = arith.constant 0 : i32
    %1 = arith.cmpi eq, %arg1, %c0_i32_0 : i32
    %2 = arith.andi %0, %1 : i1
    %3 = arith.extui %2 : i1 to i32
    %c0_i32_1 = arith.constant 0 : i32
    %4 = arith.cmpi ne, %3, %c0_i32_1 : i32
    scf.if %4 {
      %cst_30 = arith.constant 0.000000e+00 : f32
      %45 = vector.broadcast %cst_30 : f32 to vector<8x1xf32>
      %c0_31 = arith.constant 0 : index
      %c0_32 = arith.constant 0 : index
      %46 = vector.load %arg11[%c0_31, %c0_32] : memref<8x1xf32, #tpu.memory_space<vmem>>, vector<8x1xf32>
      tpu.vector_store %arg11[%c0_31, %c0_32], %45 {strides = array<i32>} : memref<8x1xf32, #tpu.memory_space<vmem>>, vector<8x1xf32>,
    } else {
    }
    %c0_i32_2 = arith.constant 0 : i32
    %5 = arith.cmpi eq, %arg1, %c0_i32_2 : i32
    %6 = arith.extui %5 : i1 to i32
    %c0_i32_3 = arith.constant 0 : i32
    %7 = arith.cmpi ne, %6, %c0_i32_3 : i32
    scf.if %7 {
      %cst_30 = arith.constant 0xFF800000 : f32
      %45 = vector.broadcast %cst_30 : f32 to vector<8x1xf32>
      %c0_31 = arith.constant 0 : index
      %c0_32 = arith.constant 0 : index
      %46 = vector.load %arg7[%c0_31, %c0_32] : memref<8x1xf32, #tpu.memory_space<vmem>>, vector<8x1xf32>
      tpu.vector_store %arg7[%c0_31, %c0_32], %45 {strides = array<i32>} : memref<8x1xf32, #tpu.memory_space<vmem>>, vector<8x1xf32>,
      %cst_33 = arith.constant 0.000000e+00 : f32
      %47 = vector.broadcast %cst_33 : f32 to vector<8x1xf32>
      %c0_34 = arith.constant 0 : index
      %c0_35 = arith.constant 0 : index
      %48 = vector.load %arg8[%c0_34, %c0_35] : memref<8x1xf32, #tpu.memory_space<vmem>>, vector<8x1xf32>
      tpu.vector_store %arg8[%c0_34, %c0_35], %47 {strides = array<i32>} : memref<8x1xf32, #tpu.memory_space<vmem>>, vector<8x1xf32>,
      %cst_36 = arith.constant 0.000000e+00 : f32
      %49 = vector.broadcast %cst_36 : f32 to vector<8x1xf32>
      %c0_37 = arith.constant 0 : index
      %c0_38 = arith.constant 0 : index
      %50 = vector.load %arg9[%c0_37, %c0_38] : memref<8x1xf32, #tpu.memory_space<vmem>>, vector<8x1xf32>
      tpu.vector_store %arg9[%c0_37, %c0_38], %49 {strides = array<i32>} : memref<8x1xf32, #tpu.memory_space<vmem>>, vector<8x1xf32>,
      %cst_39 = arith.constant 0.000000e+00 : f32
      %51 = vector.broadcast %cst_39 : f32 to vector<8x1xf32>
      %c0_40 = arith.constant 0 : index
      %c0_41 = arith.constant 0 : index
      %52 = vector.load %arg10[%c0_40, %c0_41] : memref<8x1xf32, #tpu.memory_space<vmem>>, vector<8x1xf32>
      tpu.vector_store %arg10[%c0_40, %c0_41], %51 {strides = array<i32>} : memref<8x1xf32, #tpu.memory_space<vmem>>, vector<8x1xf32>,
    } else {
    }
    %c0 = arith.constant 0 : index
    %c0_4 = arith.constant 0 : index
    %8 = vector.load %arg2[%c0, %c0_4] : memref<8x2048xf32, #tpu.memory_space<vmem>>, vector<8x2048xf32>
    %c0_5 = arith.constant 0 : index
    %c0_6 = arith.constant 0 : index
    %9 = vector.load %arg3[%c0_5, %c0_6] : memref<8x2048xf32, #tpu.memory_space<vmem>>, vector<8x2048xf32>
    %c0_7 = arith.constant 0 : index
    %c0_8 = arith.constant 0 : index
    %10 = vector.load %arg7[%c0_7, %c0_8] : memref<8x1xf32, #tpu.memory_space<vmem>>, vector<8x1xf32>
    %cst = arith.constant dense<0xFF800000> : vector<8xf32>
    %11 = vector.multi_reduction <maximumf>, %8, %cst [1] : vector<8x2048xf32> to vector<8xf32>
    %12 = vector.shape_cast %11 : vector<8xf32> to vector<8x1xf32>
    %13 = arith.maximumf %10, %12 : vector<8x1xf32>
    %c0_9 = arith.constant 0 : index
    %c0_10 = arith.constant 0 : index
    %14 = vector.load %arg8[%c0_9, %c0_10] : memref<8x1xf32, #tpu.memory_space<vmem>>, vector<8x1xf32>
    %15 = arith.subf %10, %13 : vector<8x1xf32>
    %16 = math.exp %15 : vector<8x1xf32>
    %17 = arith.mulf %14, %16 : vector<8x1xf32>
    %18 = vector.broadcast %13 : vector<8x1xf32> to vector<8x2048xf32>
    %19 = arith.subf %8, %18 : vector<8x2048xf32>
    %20 = math.exp %19 : vector<8x2048xf32>
    %cst_11 = arith.constant dense<0.000000e+00> : vector<8xf32>
    %21 = vector.multi_reduction <add>, %20, %cst_11 [1] : vector<8x2048xf32> to vector<8xf32>
    %22 = vector.shape_cast %21 : vector<8xf32> to vector<8x1xf32>
    %23 = arith.addf %17, %22 : vector<8x1xf32>
    %c0_12 = arith.constant 0 : index
    %c0_13 = arith.constant 0 : index
    %24 = vector.load %arg8[%c0_12, %c0_13] : memref<8x1xf32, #tpu.memory_space<vmem>>, vector<8x1xf32>
    tpu.vector_store %arg8[%c0_12, %c0_13], %23 {strides = array<i32>} : memref<8x1xf32, #tpu.memory_space<vmem>>, vector<8x1xf32>,
    %c0_14 = arith.constant 0 : index
    %c0_15 = arith.constant 0 : index
    %25 = vector.load %arg9[%c0_14, %c0_15] : memref<8x1xf32, #tpu.memory_space<vmem>>, vector<8x1xf32>
    %26 = arith.mulf %9, %8 : vector<8x2048xf32>
    %cst_16 = arith.constant dense<0.000000e+00> : vector<8xf32>
    %27 = vector.multi_reduction <add>, %26, %cst_16 [1] : vector<8x2048xf32> to vector<8xf32>
    %28 = vector.shape_cast %27 : vector<8xf32> to vector<8x1xf32>
    %29 = arith.addf %25, %28 : vector<8x1xf32>
    %c0_17 = arith.constant 0 : index
    %c0_18 = arith.constant 0 : index
    %30 = vector.load %arg9[%c0_17, %c0_18] : memref<8x1xf32, #tpu.memory_space<vmem>>, vector<8x1xf32>
    tpu.vector_store %arg9[%c0_17, %c0_18], %29 {strides = array<i32>} : memref<8x1xf32, #tpu.memory_space<vmem>>, vector<8x1xf32>,
    %c0_19 = arith.constant 0 : index
    %c0_20 = arith.constant 0 : index
    %31 = vector.load %arg10[%c0_19, %c0_20] : memref<8x1xf32, #tpu.memory_space<vmem>>, vector<8x1xf32>
    %cst_21 = arith.constant dense<0.000000e+00> : vector<8xf32>
    %32 = vector.multi_reduction <add>, %9, %cst_21 [1] : vector<8x2048xf32> to vector<8xf32>
    %33 = vector.shape_cast %32 : vector<8xf32> to vector<8x1xf32>
    %34 = arith.addf %31, %33 : vector<8x1xf32>
    %c0_22 = arith.constant 0 : index
    %c0_23 = arith.constant 0 : index
    %35 = vector.load %arg10[%c0_22, %c0_23] : memref<8x1xf32, #tpu.memory_space<vmem>>, vector<8x1xf32>
    tpu.vector_store %arg10[%c0_22, %c0_23], %34 {strides = array<i32>} : memref<8x1xf32, #tpu.memory_space<vmem>>, vector<8x1xf32>,
    %c0_24 = arith.constant 0 : index
    %c0_25 = arith.constant 0 : index
    %36 = vector.load %arg7[%c0_24, %c0_25] : memref<8x1xf32, #tpu.memory_space<vmem>>, vector<8x1xf32>
    tpu.vector_store %arg7[%c0_24, %c0_25], %13 {strides = array<i32>} : memref<8x1xf32, #tpu.memory_space<vmem>>, vector<8x1xf32>,
    %c1_i32 = arith.constant 1 : i32
    %37 = arith.cmpi eq, %arg1, %c1_i32 : i32
    %38 = arith.extui %37 : i1 to i32
    %c0_i32_26 = arith.constant 0 : i32
    %39 = arith.cmpi ne, %38, %c0_i32_26 : i32
    scf.if %39 {
      %c0_30 = arith.constant 0 : index
      %c0_31 = arith.constant 0 : index
      %45 = vector.load %arg7[%c0_30, %c0_31] : memref<8x1xf32, #tpu.memory_space<vmem>>, vector<8x1xf32>
      %c0_32 = arith.constant 0 : index
      %c0_33 = arith.constant 0 : index
      %46 = vector.load %arg8[%c0_32, %c0_33] : memref<8x1xf32, #tpu.memory_space<vmem>>, vector<8x1xf32>
      %47 = math.log %46 : vector<8x1xf32>
      %48 = arith.addf %45, %47 : vector<8x1xf32>
      %c0_34 = arith.constant 0 : index
      %c0_35 = arith.constant 0 : index
      %49 = vector.load %arg11[%c0_34, %c0_35] : memref<8x1xf32, #tpu.memory_space<vmem>>, vector<8x1xf32>
      %c0_36 = arith.constant 0 : index
      %c0_37 = arith.constant 0 : index
      %50 = vector.load %arg10[%c0_36, %c0_37] : memref<8x1xf32, #tpu.memory_space<vmem>>, vector<8x1xf32>
      %51 = arith.mulf %48, %50 : vector<8x1xf32>
      %c0_38 = arith.constant 0 : index
      %c0_39 = arith.constant 0 : index
      %52 = vector.load %arg9[%c0_38, %c0_39] : memref<8x1xf32, #tpu.memory_space<vmem>>, vector<8x1xf32>
      %53 = arith.subf %51, %52 : vector<8x1xf32>
      %54 = arith.addf %49, %53 : vector<8x1xf32>
      %c0_40 = arith.constant 0 : index
      %c0_41 = arith.constant 0 : index
      %55 = vector.load %arg11[%c0_40, %c0_41] : memref<8x1xf32, #tpu.memory_space<vmem>>, vector<8x1xf32>
      tpu.vector_store %arg11[%c0_40, %c0_41], %54 {strides = array<i32>} : memref<8x1xf32, #tpu.memory_space<vmem>>, vector<8x1xf32>,
    } else {
    }
    %c0_i32_27 = arith.constant 0 : i32
    %40 = arith.cmpi eq, %arg0, %c0_i32_27 : i32
    %c1_i32_28 = arith.constant 1 : i32
    %41 = arith.cmpi eq, %arg1, %c1_i32_28 : i32
    %42 = arith.andi %40, %41 : i1
    %43 = arith.extui %42 : i1 to i32
    %c0_i32_29 = arith.constant 0 : i32
    %44 = arith.cmpi ne, %43, %c0_i32_29 : i32
    scf.if %44 {
      %c0_30 = arith.constant 0 : index
      %c0_31 = arith.constant 0 : index
      %45 = vector.load %arg11[%c0_30, %c0_31] : memref<8x1xf32, #tpu.memory_space<vmem>>, vector<8x1xf32>
      %46 = vector.shape_cast %45 : vector<8x1xf32> to vector<1x8x1xf32>
      %cst_32 = arith.constant dense<0.000000e+00> : vector<1xf32>
      %47 = vector.multi_reduction <add>, %46, %cst_32 [1, 2] : vector<1x8x1xf32> to vector<1xf32>
      %48 = vector.shape_cast %47 : vector<1xf32> to vector<1x1x1xf32>
      %49 = vector.extract %48[0, 0, 0] : f32 from vector<1x1x1xf32>
      %50 = vector.broadcast %49 : f32 to vector<1x1xf32>
      %c0_33 = arith.constant 0 : index
      %c0_34 = arith.constant 0 : index
      %51 = vector.load %arg4[%c0_33, %c0_34] : memref<1x24xf32, #tpu.memory_space<vmem>>, vector<1x24xf32>
      %c0_35 = arith.constant 0 : index
      %c0_36 = arith.constant 0 : index
      %52 = vector.load %arg5[%c0_35, %c0_36] : memref<1x24xf32, #tpu.memory_space<vmem>>, vector<1x24xf32>
      %53 = arith.subf %51, %52 : vector<1x24xf32>
      %54 = math.absf %53 : vector<1x24xf32>
      %55 = vector.shape_cast %54 : vector<1x24xf32> to vector<1x1x24xf32>
      %cst_37 = arith.constant dense<0.000000e+00> : vector<1xf32>
      %56 = vector.multi_reduction <add>, %55, %cst_37 [1, 2] : vector<1x1x24xf32> to vector<1xf32>
      %57 = vector.shape_cast %56 : vector<1xf32> to vector<1x1x1xf32>
      %58 = vector.extract %57[0, 0, 0] : f32 from vector<1x1x1xf32>
      %59 = vector.broadcast %58 : f32 to vector<1x1xf32>
      %cst_38 = arith.constant 6.250000e-02 : f32
      %60 = vector.broadcast %cst_38 : f32 to vector<1x1xf32>
      %61 = arith.mulf %60, %50 : vector<1x1xf32>
      %cst_39 = arith.constant 0.020833334 : f32
      %62 = vector.broadcast %cst_39 : f32 to vector<1x1xf32>
      %63 = arith.mulf %62, %59 : vector<1x1xf32>
      %64 = arith.addf %61, %63 : vector<1x1xf32>
      %c0_40 = arith.constant 0 : index
      %c0_41 = arith.constant 0 : index
      %65 = vector.load %arg6[%c0_40, %c0_41] : memref<1x1xf32, #tpu.memory_space<vmem>>, vector<1x1xf32>
      tpu.vector_store %arg6[%c0_40, %c0_41], %64 {strides = array<i32>} : memref<1x1xf32, #tpu.memory_space<vmem>>, vector<1x1xf32>,
    } else {
    }
    return
  }
  func.func @transform_0(%arg0: i32, %arg1: i32) -> (i32, i32) {
    %c0_i32 = arith.constant 0 : i32
    return %arg0, %arg1 : i32, i32
  }
  func.func @transform_1(%arg0: i32, %arg1: i32) -> (i32, i32) {
    %c0_i32 = arith.constant 0 : i32
    return %arg0, %arg1 : i32, i32
  }
  func.func @transform_2(%arg0: i32, %arg1: i32) -> (i32, i32) {
    %c0_i32 = arith.constant 0 : i32
    %c0_i32_0 = arith.constant 0 : i32
    %c0_i32_1 = arith.constant 0 : i32
    return %c0_i32, %c0_i32_0 : i32, i32
  }
  func.func @transform_3(%arg0: i32, %arg1: i32) -> (i32, i32) {
    %c0_i32 = arith.constant 0 : i32
    %c0_i32_0 = arith.constant 0 : i32
    %c0_i32_1 = arith.constant 0 : i32
    return %c0_i32, %c0_i32_0 : i32, i32
  }
  func.func @transform_4(%arg0: i32, %arg1: i32) -> (i32, i32) {
    %c0_i32 = arith.constant 0 : i32
    %c0_i32_0 = arith.constant 0 : i32
    %c0_i32_1 = arith.constant 0 : i32
    return %c0_i32, %c0_i32_0 : i32, i32
  }
}

</mosaic_0001>

<bundles_post_ra>
// kernel: tpu_custom_call.1
= control target key start
LH: loop header
LB: loop body
LE: loop exit
PB: predicated region body
PF: predicated region fallthrough
CT: control target
= control target key end

     0   :  { %9 = vsyncpa [#allocation8], 0  ;;  %s1290_s0 = inlined_call_operand.hbm [shape: f32[8,4096], index: 0, kind: input, shape index: {}]   ;;  %s1291_s1 = inlined_call_operand.hbm [shape: f32[8,4096], index: 1, kind: input, shape index: {}]   ;;  %s1292_s2 = inlined_call_operand.vmem [shape: f32[1,24], index: 2, kind: input, shape index: {}]   ;;  %s1293_s3 = inlined_call_operand.vmem [shape: f32[1,24], index: 3, kind: input, shape index: {}]   ;;  %s1294_s4 = inlined_call_operand.hbm [shape: f32[1,1], index: 4, kind: output, shape index: {}]  }
   0x1   :  { %11 = vsyncpa [#allocation8 + $0x1], 0 }
   0x2   :  { %12 = vsyncpa [#allocation11], 0 }
   0x3   :  { %14 = vsyncpa [#allocation11 + $0x1], 0 }
   0x4   :  { %15 = vsyncpa [#allocation9], 0  ;;  %s926_s15 = smov 0   ;;  %s928_s16 = smov 0  }
   0x5   :  { %s930_s17 = smov 0   ;;  %s932_s18 = smov 0  }
   0x6   :  { %s934_s19 = smov 0   ;;  %s936_s20 = smov 0  }
   0x7 LB: > { %s612_s21 = sadd.s32 4294967295, %s892_s20   ;;  %s30_s22 = sadd.s32 1, %s888_s19  ;;  %s892_s20 = sphi %s936_s20, %s21_s20   ;;  %s888_s19 = sphi %s934_s19, %s1309_s19   ;;  %s884_s18 = sphi %s932_s18, %s1308_s18   ;;  %s880_s17 = sphi %s930_s17, %s1307_s17   ;;  %s876_s16 = sphi %s928_s16, %s1306_s16   ;;  %s872_s15 = sphi %s926_s15, %s1305_s15  }
   0x8   : > { %p31_p0 = scmp.ge.s32.totalorder %s30_s22, 2  ;;  %s42_s23 = sadd.s32 1, %s880_s17 }
   0x9   : > { %p49_p1 = scmp.ne.s32.totalorder %s880_s17, %s876_s16  ;;  %p50_p2 = scmp.eq.s32.totalorder %s892_s20, 0 }
   0xa   : > { %s1311_s22 = smov (%p31_p0, %s30_s22), 0  ;;  %p55_p4 = scmp.ne.s32.totalorder %s876_s16, %s872_s15 }
   0xb   : > { %p962_p3 = por %p50_p2, %p49_p1  ;;  %s38_s25 = ssub.s32 %s888_s19, %s1311_s22 }
   0xc   : > { %p56_p5 = scmp.eq.s32.totalorder %s612_s21, 0  ;;  %p40_p6 = scmp.eq.s32.totalorder %s38_s25, 0 }
   0xd   : > { %p655_p8 = scmp.lt.s32.totalorder %s892_s20, 2  ;;  %s980_s28 = sand.u32 1, %s880_s17  }
   0xe   : > { %p971_p7 = por %p56_p5, %p55_p4  ;;  %s632_s29 = sshll.u32 %s888_s19, 11 }
   0xf   : > { %s977_s27 = scalar_select %p40_p6, %s880_s17, %s42_s23  }
  0x10   : > { %s1297_s26 = scalar_select %p971_p7, 1, 0 }
  0x11   : > { %s615_s30 = sshll.u32 %s980_s28, 7  ;;  %s989_s7 = scalar_lea.hbm %s1290_s0, %s632_s29 }
  0x12   : > { %s180_s8 = scalar_lea.vmem [#allocation7], %s615_s30  ;;  %p995_p9 = pnand %p655_p8, %p962_p3 }
  0x13   : > { %s190_s9 = sshll.u32 %s180_s8, 4  ;;  %s177_s11 = scalar_lea.sflag [#allocation8], %s980_s28  ;;  %s999_s9 = int_to_ptr.vmem [resolvable:$true] %s190_s9 }
  0x14   : > { %s748_s12 = scalar_lea.hbm %s989_s7, 2048  ;;  %p750_p13 = pneg %p995_p9 }
  0x15   : > { %p749_p12 = scmp.ne.s32.totalorder %s989_s7, %s748_s12  ;;  %s753_s15 = scalar_lea.hbm %s1290_s0, 4096 }
  0x16   : > { %p754_p2 = scmp.lt.u32.totalorder %s989_s7, %s1290_s0  ;;  %p755_p3 = scmp.lt.u32.totalorder %s753_s15, %s748_s12 }
  0x17   : > { %p751_p0 = pnand %p750_p13, %p749_p12  ;;  %p757_p5 = scmp.lt.u32.totalorder %s748_s12, %s989_s7 }
  0x18   : > { %p756_p4 = por %p755_p3, %p754_p2 }
  0x19   : > { %p752_p1 = pneg %p751_p0 }
  0x1a   : > { %p758_p6 = por %p757_p5, %p756_p4 }
  0x1c   : > { %p759_p8 = pnand %p758_p6, %p752_p1 }
  0x1e   : > { %762 = shalt.err (!%p759_p8)
}
  0x1f   : > { %s763_s25 = scalar_lea.vmem %s999_s9, 2048  ;;  %s894_s5 = smov [#allocation7]  }
  0x20   : > { %p764_p12 = scmp.ne.s32.totalorder %s999_s9, %s763_s25  ;;  %s768_s6 = sshll.u32 %s894_s5, 4  ;;  %s769_s6 = int_to_ptr.vmem [resolvable:$false] %s768_s6 }
  0x21   : > { %s770_s8 = scalar_lea.vmem %s769_s6, 4096  ;;  %p771_p11 = scmp.lt.s32.totalorder %s999_s9, %s769_s6 }
  0x22   : > { %p766_p0 = pnand %p764_p12, %p750_p13  ;;  %p772_p2 = scmp.lt.s32.totalorder %s770_s8, %s763_s25 }
  0x24   : > { %p767_p10 = pneg %p766_p0  ;;  %p773_p3 = por %p772_p2, %p771_p11 }
  0x26   : > { %p774_p4 = pnand %p773_p3, %p767_p10 }
  0x28   : > { %777 = shalt.err (!%p774_p4)
}
  0x29   : > { %651 = dma.hbm_to_vmem [thread:$0]  (!%p995_p9), %s989_s7, 2048, %s999_s9, %s177_s11  }
  0x2a   : > { %p1299_p1 = scmp.lt.s32.totalorder %s892_s20, 3  ;;  %p1300_p5 = scmp.ge.s32.totalorder %s892_s20, 1 }
  0x2b   : > { %s1042_s15 = scalar_lea.hbm %s1291_s1, %s632_s29  ;;  %s201_s23 = scalar_lea.vmem [#allocation10], %s615_s30 }
  0x2c   : > { %p1033_p6 = pnand %p1300_p5, %p1299_p1  ;;  %s211_s24 = sshll.u32 %s201_s23, 4  ;;  %s212_s24 = int_to_ptr.vmem [resolvable:$true] %s211_s24 }
  0x2d   : > { %s198_s7 = scalar_lea.sflag [#allocation11], %s980_s28  ;;  %s778_s9 = scalar_lea.hbm %s1042_s15, 2048 }
  0x2e   : > { %s1301_s12 = scalar_select %p1033_p6, 1, 0 }
  0x2f   : > { %p779_p10 = scmp.ne.s32.totalorder %s1042_s15, %s778_s9  ;;  %s783_s29 = scalar_lea.hbm %s1291_s1, 4096 }
  0x30   : > { %p784_p12 = scmp.lt.u32.totalorder %s1042_s15, %s1291_s1  ;;  %p785_p0 = scmp.lt.u32.totalorder %s783_s29, %s778_s9 }
  0x31   : > { %p781_p11 = pnand %p779_p10, %p750_p13  ;;  %p787_p3 = scmp.lt.u32.totalorder %s778_s9, %s1042_s15 }
  0x32   : > { %p786_p2 = por %p785_p0, %p784_p12 }
  0x33   : > { %p782_p8 = pneg %p781_p11 }
  0x34   : > { %p788_p4 = por %p787_p3, %p786_p2 }
  0x36   : > { %p789_p1 = pnand %p788_p4, %p782_p8 }
  0x38   : > { %792 = shalt.err (!%p789_p1)
}
  0x39   : > { %s793_s28 = scalar_lea.vmem %s212_s24, 2048  ;;  %s895_s30 = smov [#allocation10]  }
  0x3a   : > { %p794_p5 = scmp.ne.s32.totalorder %s212_s24, %s793_s28  ;;  %s798_s8 = sshll.u32 %s895_s30, 4  ;;  %s799_s8 = int_to_ptr.vmem [resolvable:$false] %s798_s8 }
  0x3b   : > { %s800_s13 = scalar_lea.vmem %s799_s8, 4096  ;;  %p801_p7 = scmp.lt.s32.totalorder %s212_s24, %s799_s8 }
  0x3c   : > { %p796_p10 = pnand %p794_p5, %p750_p13  ;;  %p802_p6 = scmp.lt.s32.totalorder %s800_s13, %s793_s28 }
  0x3e   : > { %p797_p11 = pneg %p796_p10  ;;  %p803_p0 = por %p802_p6, %p801_p7 }
  0x40   : > { %p804_p12 = pnand %p803_p0, %p797_p11 }
  0x42   : > { %807 = shalt.err (!%p804_p12)
}
  0x43   : > { %654 = dma.hbm_to_vmem [thread:$0]  (!%p995_p9), %s1042_s15, 2048, %s212_s24, %s198_s7  }
  0x44   : > { %p1302_p8 = scmp.ne.s32.totalorder %s1301_s12, 0 }
  0x45   : > { %s222_s14 = sand.u32 (!%p1302_p8), 1, %s876_s16   ;;  %p1303_p13 = scmp.ne.s32.totalorder (!%p1302_p8), %s1297_s26, 0 }
  0x46   : > { %220 = sbr.rel (%p1302_p8) target bundleno = 850 (0x352), region = 36  ;;  %s622_s23 = sshll.u32 (!%p1302_p8), %s222_s14, 7 }
  0x47   : > { %s223_s9 = scalar_lea.sflag (!%p1302_p8), [#allocation8], %s222_s14  ;;  %s1069_s11 = scalar_lea.vmem (!%p1302_p8), [#allocation7], %s622_s23 }
  0x4d   : > { %859 = dma.done.wait (%p1303_p13), %s223_s9, 2048  }
  0x4e   : > { %861 = vsyncadd (%p1303_p13), %s223_s9, 4294965248  ;;  %s232_s25 = scalar_lea.sflag [#allocation11], %s222_s14  ;;  %s1075_s10 = scalar_lea.vmem [#allocation10], %s622_s23 }
  0x4f   : > { %863 = dma.done.wait (%p1303_p13), %s232_s25, 2048  }
  0x50   : > { %865 = vsyncadd (%p1303_p13), %s232_s25, 4294965248  ;;  %p263_p7 = scmp.eq.s32.totalorder %s884_s18, 0 }
  0x51   : > { %vm268_vm0 = vcmask (%p263_p7), 7168   ;;  %v896_v0 = vmov (%p263_p7), 0.0  }
  0x52   : > { %267 = sbr.rel (!%p263_p7) target bundleno = 89 (0x59), region = 48  ;;  %269 = vst.msk [vmem:[#allocation6] sm:$0xff] (%p263_p7), %vm268_vm0, %v896_v0 }
  0x59 PF: > { %p625_p9 = scmp.ne.s32.totalorder %s884_s18, 0 }
  0x5a   : > { %vm273_vm1 = vcmask (!%p625_p9), 7168   ;;  %v897_v1 = vmov (!%p625_p9), -inf   ;;  %v898_v2 = vmov (!%p625_p9), 0.0  }
  0x5b   : > { %272 = sbr.rel (%p625_p9) target bundleno = 98 (0x62), region = 52  ;;  %274 = vst.msk [vmem:[#allocation2] sm:$0xff] (!%p625_p9), %vm273_vm1, %v897_v1  ;;  %275 = vst.msk [vmem:[#allocation3] sm:$0xff] (!%p625_p9), %vm273_vm1, %v898_v2 }
  0x5c   : > { %276 = vst.msk [vmem:[#allocation4] sm:$0xff] (!%p625_p9), %vm273_vm1, %v898_v2  ;;  %277 = vst.msk [vmem:[#allocation5] sm:$0xff] (!%p625_p9), %vm273_vm1, %v898_v2 }
  0x62 PF: > { %v1084_v3 = vld [vmem:[%s1069_s11] sm:$0xff]  ;;  %v1087_v4 = vld [vmem:[%s1069_s11 + $0x8] sm:$0xff]  ;;  %v1090_v5 = vld [vmem:[%s1069_s11 + $0x10] sm:$0xff]  ;;  %v899_v53 = vmov 0   ;;  %vm405_vm2 = vcmask 7168   ;;  %p464_p6 = scmp.eq.s32.totalorder %s884_s18, 1 }
  0x63   : > { %v1093_v6 = vld [vmem:[%s1069_s11 + $0x18] sm:$0xff]  ;;  %v1096_v7 = vld [vmem:[%s1069_s11 + $0x20] sm:$0xff]  ;;  %v1099_v8 = vld [vmem:[%s1069_s11 + $0x28] sm:$0xff]  ;;  %711 = vset.pattern.permute.xlu0 %v899_v53  ;;  %p626_p2 = scmp.ne.s32.totalorder %s884_s18, 1 }
  0x64   : > { %v1102_v9 = vld [vmem:[%s1069_s11 + $0x30] sm:$0xff]  ;;  %v1105_v10 = vld [vmem:[%s1069_s11 + $0x38] sm:$0xff]  ;;  %v1108_v11 = vld [vmem:[%s1069_s11 + $0x40] sm:$0xff]  ;;  %v311_v12 = vmax.f32 %v1084_v3, %v1096_v7  ;;  %v312_v13 = vmax.f32 %v1087_v4, %v1099_v8 }
  0x65   : > { %v1115_v14 = vld [vmem:[%s1069_s11 + $0x48] sm:$0xff]  ;;  %v1118_v15 = vld [vmem:[%s1069_s11 + $0x50] sm:$0xff]  ;;  %v1121_v16 = vld [vmem:[%s1069_s11 + $0x58] sm:$0xff]  ;;  %v313_v17 = vmax.f32 %v1090_v5, %v1102_v9  ;;  %v314_v18 = vmax.f32 %v1093_v6, %v1105_v10 }
  0x66   : > { %v1128_v19 = vld [vmem:[%s1069_s11 + $0x60] sm:$0xff]  ;;  %v1131_v20 = vld [vmem:[%s1069_s11 + $0x68] sm:$0xff]  ;;  %v1134_v21 = vld [vmem:[%s1069_s11 + $0x70] sm:$0xff]  ;;  %v315_v22 = vmax.f32 %v311_v12, %v1108_v11  ;;  %v316_v23 = vmax.f32 %v312_v13, %v1115_v14 }
  0x67   : > { %v1139_v24 = vld [vmem:[%s1069_s11 + $0x78] sm:$0xff]  ;;  %v317_v25 = vmax.f32 %v313_v17, %v1118_v15  ;;  %v318_v26 = vmax.f32 %v314_v18, %v1121_v16  ;;  %v294_v32 = vld [vmem:[%s1075_s10] sm:$0xff]  ;;  %v295_v33 = vld [vmem:[%s1075_s10 + $0x8] sm:$0xff] }
  0x68   : > { %v319_v27 = vmax.f32 %v315_v22, %v1128_v19  ;;  %v320_v28 = vmax.f32 %v316_v23, %v1131_v20  ;;  %v444_v35 = vadd.f32 %v295_v33, %v294_v32  ;;  %v296_v36 = vld [vmem:[%s1075_s10 + $0x10] sm:$0xff]  ;;  %v297_v39 = vld [vmem:[%s1075_s10 + $0x18] sm:$0xff]  ;;  %v298_v41 = vld [vmem:[%s1075_s10 + $0x20] sm:$0xff]  ;;  %v408_v54 = vmul.f32 %v294_v32, %v1084_v3 }
  0x69   : > { %v321_v29 = vmax.f32 %v317_v25, %v1134_v21  ;;  %v322_v30 = vmax.f32 %v318_v26, %v1139_v24  ;;  %v299_v43 = vld [vmem:[%s1075_s10 + $0x28] sm:$0xff]  ;;  %v300_v45 = vld [vmem:[%s1075_s10 + $0x30] sm:$0xff]  ;;  %v301_v47 = vld [vmem:[%s1075_s10 + $0x38] sm:$0xff]  ;;  %v409_v55 = vmul.f32 %v295_v33, %v1087_v4  ;;  %v410_v56 = vmul.f32 %v296_v36, %v1090_v5 }
  0x6a   : > { %v323_v31 = vmax.f32 %v319_v27, %v320_v28  ;;  %v445_v38 = vadd.f32 %v444_v35, %v296_v36  ;;  %v302_v49 = vld [vmem:[%s1075_s10 + $0x40] sm:$0xff]  ;;  %v303_v51 = vld [vmem:[%s1075_s10 + $0x48] sm:$0xff]  ;;  %v411_v58 = vmul.f32 %v297_v39, %v1093_v6  ;;  %v412_v60 = vmul.f32 %v298_v41, %v1096_v7  ;;  %v304_v18 = vld [vmem:[%s1075_s10 + $0x50] sm:$0xff] }
  0x6b   : > { %v324_v34 = vmax.f32 %v321_v29, %v322_v30  ;;  %v424_v57 = vadd.f32 %v409_v55, %v408_v54  ;;  %v413_v62 = vmul.f32 %v299_v43, %v1099_v8  ;;  %v414_v0 = vmul.f32 %v300_v45, %v1102_v9  ;;  %v1168_v25 = vld [vmem:[#allocation2] sm:$0xff]  ;;  %v306_v30 = vld [vmem:[%s1075_s10 + $0x60] sm:$0xff]  ;;  %v307_v33 = vld [vmem:[%s1075_s10 + $0x68] sm:$0xff] }
  0x6c   : > { %v446_v40 = vadd.f32 %v445_v38, %v297_v39  ;;  %v415_v2 = vmul.f32 %v301_v47, %v1105_v10  ;;  %v416_v13 = vmul.f32 %v302_v49, %v1108_v11  ;;  %v417_v22 = vmul.f32 %v303_v51, %v1115_v14  ;;  %v305_v29 = vld [vmem:[%s1075_s10 + $0x58] sm:$0xff] }
  0x6d   : > { %v325_v37 = vmax.f32 %v323_v31, %v324_v34  ;;  %v425_v59 = vadd.f32 %v424_v57, %v410_v56  ;;  %v418_v26 = vmul.f32 %v304_v18, %v1118_v15  ;;  %v419_v34 = vmul.f32 %v305_v29, %v1121_v16 }
  0x6e   : > { %v447_v42 = vadd.f32 %v446_v40, %v298_v41  ;;  %v420_v35 = vmul.f32 %v306_v30, %v1128_v19  ;;  %v421_v38 = vmul.f32 %v307_v33, %v1131_v20  ;;  %v309_v40 = vld [vmem:[%s1075_s10 + $0x78] sm:$0xff] }
  0x6f   : > { %326 = vmax.xlane.f32.xlu0 %v325_v37  ;;  %v426_v61 = vadd.f32 %v425_v59, %v411_v58  ;;  %v308_v37 = vld [vmem:[%s1075_s10 + $0x70] sm:$0xff] }
  0x70   : > { %v448_v44 = vadd.f32 %v447_v42, %v299_v43  ;;  %v422_v41 = vmul.f32 %v308_v37, %v1134_v21  ;;  %v423_v43 = vmul.f32 %v309_v40, %v1139_v24 }
  0x71   : > { %v427_v63 = vadd.f32 %v426_v61, %v412_v60 }
  0x72   : > { %v449_v46 = vadd.f32 %v448_v44, %v300_v45 }
  0x73   : > { %v428_v1 = vadd.f32 %v427_v63, %v413_v62 }
  0x74   : > { %v450_v48 = vadd.f32 %v449_v46, %v301_v47 }
  0x75   : > { %v429_v12 = vadd.f32 %v428_v1, %v414_v0 }
  0x76   : > { %v451_v50 = vadd.f32 %v450_v48, %v302_v49 }
  0x77   : > { %v430_v17 = vadd.f32 %v429_v12, %v415_v2 }
  0x78   : > { %v452_v52 = vadd.f32 %v451_v50, %v303_v51 }
  0x79   : > { %v431_v23 = vadd.f32 %v430_v17, %v416_v13 }
  0x7a   : > { %v453_v47 = vadd.f32 %v452_v52, %v304_v18 }
  0x7b   : > { %v432_v31 = vadd.f32 %v431_v23, %v417_v22 }
  0x7c   : > { %v454_v48 = vadd.f32 %v453_v47, %v305_v29 }
  0x7d   : > { %v433_v36 = vadd.f32 %v432_v31, %v418_v26 }
  0x7e   : > { %v455_v49 = vadd.f32 %v454_v48, %v306_v30 }
  0x7f   : > { %v434_v39 = vadd.f32 %v433_v36, %v419_v34 }
  0x80   : > { %v456_v50 = vadd.f32 %v455_v49, %v307_v33  ;;  %v407_v33 = vld [vmem:[#allocation4] sm:$0xff] }
  0x81   : > { %v435_v42 = vadd.f32 %v434_v39, %v420_v35 }
  0x82   : > { %v457_v51 = vadd.f32 %v456_v50, %v308_v37 }
  0x83   : > { %v436_v44 = vadd.f32 %v435_v42, %v421_v38 }
  0x84   : > { %v1189_v53 = vadd.f32 %v457_v51, %v309_v40 }
  0x85   : > { %v437_v45 = vadd.f32 %v436_v44, %v422_v41 }
  0x87   : > { %v438_v46 = vadd.f32 %v437_v45, %v423_v43 }
  0x89   : > { %439 = vadd.xlane.f32.xlu1 %v438_v46 }
  0xfc   : > { %v327_v27 = vpop.xlane.xlu0 %326 }
  0xfd   : > { %v1172_v28 = vmax.f32 %v1168_v25, %v327_v27 }
  0xff   : > { %v330_v32 = vsub.f32 %v1168_v25, %v1172_v28  ;;  %463 = vst.msk [vmem:[#allocation2] sm:$0xff] %vm405_vm2, %v1172_v28  ;;  %336 = vperm.xlu0 %711, %v1172_v28  }
 0x106   : > { %v468_v28 = vld [vmem:[#allocation2] sm:$0xff] (!%p626_p2) }
 0x116   : > { %v440_v37 = vpop.xlane.xlu1 %439 }
 0x117   : > { %v441_v40 = vadd.f32 %v440_v37, %v407_v33 }
 0x119   : > { %442 = vst.msk [vmem:[#allocation4] sm:$0xff] %vm405_vm2, %v441_v40 }
 0x17e   : > { %v1191_v54 = vpop.permute.xlu0 %336 }
 0x17f   : > { %v339_v55 = vsub.f32 %v1084_v3, %v1191_v54  ;;  %v340_v56 = vsub.f32 %v1087_v4, %v1191_v54  ;;  %v341_v57 = vsub.f32 %v1090_v5, %v1191_v54  ;;  %v342_v52 = vsub.f32 %v1093_v6, %v1191_v54 }
 0x180   : > { %v343_v60 = vsub.f32 %v1096_v7, %v1191_v54  ;;  %v344_v62 = vsub.f32 %v1099_v8, %v1191_v54  ;;  %v345_v4 = vsub.f32 %v1102_v9, %v1191_v54  ;;  %v346_v6 = vsub.f32 %v1105_v10, %v1191_v54 }
 0x181   : > { %v355_v58 = vmul.f32 1.442695, %v339_v55  ;;  %v357_v59 = vmul.f32 1.442695, %v340_v56  ;;  %v359_v61 = vmul.f32 1.442695, %v341_v57  ;;  %v347_v7 = vsub.f32 %v1108_v11, %v1191_v54 }
 0x182   : > { %v361_v3 = vmul.f32 1.442695, %v342_v52  ;;  %v363_v5 = vmul.f32 1.442695, %v343_v60  ;;  %v365_v63 = vmul.f32 1.442695, %v344_v62  ;;  %v348_v8 = vsub.f32 %v1115_v14, %v1191_v54 }
 0x183   : > { %712 = vpow2.f32 %v355_v58  ;;  %v367_v0 = vmul.f32 1.442695, %v345_v4  ;;  %v369_v1 = vmul.f32 1.442695, %v346_v6  ;;  %v349_v9 = vsub.f32 %v1118_v15, %v1191_v54  ;;  %v329_v62 = vld [vmem:[#allocation3] sm:$0xff]  ;;  %v443_v6 = vld [vmem:[#allocation5] sm:$0xff] }
 0x184   : > { %714 = vpow2.f32 %v357_v59  ;;  %v371_v13 = vmul.f32 1.442695, %v347_v7  ;;  %v350_v18 = vsub.f32 %v1121_v16, %v1191_v54  ;;  %v373_v11 = vmul.f32 1.442695, %v348_v8 }
 0x185   : > { %716 = vpow2.f32 %v359_v61  ;;  %v351_v14 = vsub.f32 %v1128_v19, %v1191_v54  ;;  %v375_v26 = vmul.f32 1.442695, %v349_v9  ;;  %v352_v15 = vsub.f32 %v1131_v20, %v1191_v54 }
 0x186   : > { %718 = vpow2.f32 %v361_v3  ;;  %v377_v30 = vmul.f32 1.442695, %v350_v18  ;;  %v353_v16 = vsub.f32 %v1134_v21, %v1191_v54  ;;  %v354_v38 = vsub.f32 %v1139_v24, %v1191_v54 }
 0x187   : > { %720 = vpow2.f32 %v363_v5  ;;  %v379_v35 = vmul.f32 1.442695, %v351_v14  ;;  %v381_v39 = vmul.f32 1.442695, %v352_v15  ;;  %v331_v60 = vmul.f32 1.442695, %v330_v32 }
 0x188   : > { %722 = vpow2.f32 %v365_v63  ;;  %v383_v42 = vmul.f32 1.442695, %v353_v16  ;;  %v385_v21 = vmul.f32 1.442695, %v354_v38 }
 0x189   : > { %724 = vpow2.f32 %v367_v0 }
 0x18a   : > { %726 = vpow2.f32 %v369_v1  ;;  %v476_v1 = vld [vmem:[#allocation4] sm:$0xff] (!%p626_p2) }
 0x18b   : > { %728 = vpow2.f32 %v371_v13 }
 0x18c   : > { %730 = vpow2.f32 %v373_v11 }
 0x18d   : > { %v713_v2 = vpop.eup %712  ;;  %732 = vpow2.f32 %v375_v26 }
 0x18e   : > { %v715_v12 = vpop.eup %714  ;;  %734 = vpow2.f32 %v377_v30 }
 0x18f   : > { %v387_v10 = vadd.f32 %v715_v12, %v713_v2  ;;  %v717_v17 = vpop.eup %716  ;;  %736 = vpow2.f32 %v379_v35  ;;  %v473_v12 = vld [vmem:[#allocation6] sm:$0xff] (!%p626_p2) }
 0x190   : > { %v719_v23 = vpop.eup %718  ;;  %738 = vpow2.f32 %v381_v39 }
 0x191   : > { %v388_v22 = vadd.f32 %v717_v17, %v387_v10  ;;  %v721_v29 = vpop.eup %720  ;;  %740 = vpow2.f32 %v383_v42 }
 0x192   : > { %v723_v34 = vpop.eup %722  ;;  %742 = vpow2.f32 %v385_v21 }
 0x193   : > { %v389_v27 = vadd.f32 %v719_v23, %v388_v22  ;;  %v725_v19 = vpop.eup %724  ;;  %744 = vpow2.f32 %v331_v60 }
 0x194   : > { %v727_v41 = vpop.eup %726 }
 0x195   : > { %v390_v31 = vadd.f32 %v721_v29, %v389_v27  ;;  %v729_v44 = vpop.eup %728 }
 0x196   : > { %v731_v46 = vpop.eup %730 }
 0x197   : > { %v391_v36 = vadd.f32 %v723_v34, %v390_v31  ;;  %v733_v48 = vpop.eup %732 }
 0x198   : > { %v735_v49 = vpop.eup %734 }
 0x199   : > { %v392_v20 = vadd.f32 %v725_v19, %v391_v36  ;;  %v737_v51 = vpop.eup %736 }
 0x19a   : > { %v739_v55 = vpop.eup %738 }
 0x19b   : > { %v393_v43 = vadd.f32 %v727_v41, %v392_v20  ;;  %v741_v57 = vpop.eup %740 }
 0x19c   : > { %v743_v58 = vpop.eup %742 }
 0x19d   : > { %v394_v45 = vadd.f32 %v729_v44, %v393_v43  ;;  %v745_v61 = vpop.eup %744 }
 0x19e   : > { %v333_v3 = vmul.f32 %v745_v61, %v329_v62 }
 0x19f   : > { %v395_v47 = vadd.f32 %v731_v46, %v394_v45 }
 0x1a1   : > { %v396_v24 = vadd.f32 %v733_v48, %v395_v47 }
 0x1a3   : > { %v397_v50 = vadd.f32 %v735_v49, %v396_v24 }
 0x1a5   : > { %v398_v54 = vadd.f32 %v737_v51, %v397_v50 }
 0x1a7   : > { %v399_v56 = vadd.f32 %v739_v55, %v398_v54 }
 0x1a9   : > { %v400_v52 = vadd.f32 %v741_v57, %v399_v56 }
 0x1ab   : > { %v401_v59 = vadd.f32 %v743_v58, %v400_v52 }
 0x1ad   : > { %402 = vadd.xlane.f32.xlu1 %v401_v59 }
 0x1b1   : > { %459 = vadd.xlane.f32.xlu1 %v1189_v53 }
 0x23a   : > { %v403_v4 = vpop.xlane.xlu1 %402 }
 0x23b   : > { %v404_v5 = vadd.f32 %v403_v4, %v333_v3  ;;  %467 = sbr.rel (%p626_p2) target bundleno = 603 (0x25b), region = 56 }
 0x23d   : > { %406 = vst.msk [vmem:[#allocation3] sm:$0xff] %vm405_vm2, %v404_v5 }
 0x23e   : > { %v460_v63 = vpop.xlane.xlu1 %459 }
 0x23f   : > { %v461_v7 = vadd.f32 %v460_v63, %v443_v6 }
 0x241   : > { %462 = vst.msk [vmem:[#allocation5] sm:$0xff] %vm405_vm2, %v461_v7 }
 0x244   : > { %v469_v53 = vld [vmem:[#allocation3] sm:$0xff] }
 0x245   : > { %746 = vlog2.f32 %v469_v53 }
 0x248   : > { %v474_v0 = vld [vmem:[#allocation5] sm:$0xff] }
 0x24f   : > { %v747_v25 = vpop.eup %746 }
 0x250   : > { %v471_v32 = vmul.f32 0.6931472, %v747_v25 }
 0x252   : > { %v472_v8 = vadd.f32 %v471_v32, %v468_v28 }
 0x254   : > { %v475_v2 = vmul.f32 %v474_v0, %v472_v8 }
 0x256   : > { %v477_v9 = vsub.f32 %v475_v2, %v476_v1 }
 0x258   : > { %v478_v13 = vadd.f32 %v477_v9, %v473_v12 }
 0x25a   : > { %479 = vst.msk [vmem:[#allocation6] sm:$0xff] %vm405_vm2, %v478_v13 }
 0x25b PF: > { %483 = sbr.rel (!%p464_p6) target bundleno = 825 (0x339), region = 60  ;;  %v496_v17 = vld [vmem:[%s1292_s2] sm:$0x1] (%p464_p6)  ;;  %vm500_vm3 = vcmask (%p464_p6), 188416   ;;  %vm515_vm4 = vcmask (%p464_p6), 0  }
 0x25c   : > { %v497_v18 = vld [vmem:[%s1293_s3] sm:$0x1] (%p464_p6) }
 0x25d   : > { %v498_v22 = vsub.f32 (%p464_p6), %v496_v17, %v497_v18 }
 0x25f   : > { %v499_v23 = vand.u32 (%p464_p6), 2147483647, %v498_v22 }
 0x261   : > { %v484_v10 = vld [vmem:[#allocation6] sm:$0xff] (%p464_p6)  ;;  %v501_v14 = vsel (%p464_p6), %vm500_vm3, %v499_v23, 0.0 }
 0x262   : > { %v485_v11 = vsel %vm405_vm2, %v484_v10, 0.0 }
 0x263   : > { %486 = vadd.xlane.f32.xlu0 %v485_v11 }
 0x267   : > { %502 = vadd.xlane.f32.xlu0 %v501_v14 }
 0x2f0   : > { %v487_v26 = vpop.xlane.xlu0 %486 }
 0x2f1   : > { %v488_v27 = vrot.slane %v487_v26, 4 }
 0x2f3   : > { %v489_v29 = vadd.f32 %v488_v27, %v487_v26 }
 0x2f4   : > { %v503_v15 = vpop.xlane.xlu0 %502 }
 0x2f5   : > { %v490_v30 = vrot.slane %v489_v29, 2  ;;  %v504_v31 = vrot.slane %v503_v15, 4 }
 0x2f7   : > { %v505_v33 = vadd.f32 %v504_v31, %v503_v15  ;;  %v491_v34 = vadd.f32 %v490_v30, %v489_v29 }
 0x2f9   : > { %v506_v16 = vrot.slane %v505_v33, 2  ;;  %v492_v35 = vrot.slane %v491_v34, 1 }
 0x2fb   : > { %v507_v36 = vadd.f32 %v506_v16, %v505_v33  ;;  %v493_v37 = vadd.f32 %v492_v35, %v491_v34 }
 0x2fd   : > { %636 = vpush %v493_v37  ;;  %v508_v19 = vrot.slane %v507_v36, 1 }
 0x2ff   : > { %v509_v38 = vadd.f32 %v508_v19, %v507_v36 }
 0x301   : > { %638 = vpush %v509_v38 }
 0x32e   : > { %s637_s18 = spop %636 }
 0x32f   : > { %v495_v39 = vstv %s637_s18 }
 0x330   : > { %v512_v20 = vmul.f32 0.0625, %v495_v39 }
 0x332   : > { %s639_s7 = spop %638 }
 0x333   : > { %v511_v40 = vstv %s639_s7 }
 0x334   : > { %v513_v41 = vmul.f32 0.020833334, %v511_v40 }
 0x336   : > { %v514_v42 = vadd.f32 %v513_v41, %v512_v20 }
 0x338   : > { %516 = vst.msk [vmem:[#allocation12] sm:$0x1] %vm515_vm4, %v514_v42 }
 0x339 PF: > { %p1246_p3 = scmp.eq.s32.totalorder %s612_s21, 1  ;;  %s900_s5 = smov [#allocation12]  }
 0x33a   : > { %s524_s6 = sshll.u32 %s900_s5, 4  ;;  %s525_s6 = int_to_ptr.vmem [resolvable:$true] %s524_s6 }
 0x33b   : > { %s808_s28 = scalar_lea.vmem %s525_s6, 16  ;;  %s814_s30 = scalar_lea.vmem %s525_s6, 32 }
 0x33c   : > { %p809_p4 = scmp.ne.s32.totalorder %s525_s6, %s808_s28  ;;  %p815_p10 = scmp.lt.s32.totalorder %s525_s6, %s525_s6 }
 0x33d   : > { %p816_p11 = scmp.lt.s32.totalorder %s814_s30, %s808_s28 }
 0x33e   : > { %p810_p1 = pnand %p809_p4, %p1246_p3 }
 0x33f   : > { %p817_p0 = por %p816_p11, %p815_p10 }
 0x340   : > { %p811_p5 = pneg %p810_p1 }
 0x342   : > { %p818_p12 = pnand %p817_p0, %p811_p5 }
 0x344   : > { %821 = shalt.err (!%p818_p12)
}
 0x345   : > { %s822_s13 = scalar_lea.hbm %s1294_s4, 16 }
 0x346   : > { %p823_p8 = scmp.ne.s32.totalorder %s1294_s4, %s822_s13  ;;  %p828_p9 = scmp.lt.u32.totalorder %s822_s13, %s1294_s4 }
 0x348   : > { %p824_p13 = pnand %p823_p8, %p1246_p3 }
 0x34a   : > { %p825_p7 = pneg %p824_p13 }
 0x34c   : > { %p830_p6 = pnand %p828_p9, %p825_p7 }
 0x34e   : > { %833 = shalt.err (!%p830_p6)
}
 0x34f   : > { %645 = dma.vmem_to_hbm [thread:$0]  (%p1246_p3), %s525_s6, 16, %s1294_s4, [#allocation9]  }
 0x350   : > { %867 = dma.done.wait (%p1246_p3), [#allocation9], 16  }
 0x351   : > { %869 = vsyncadd (%p1246_p3), [#allocation9], 4294967280 }
 0x352 PF: > { %s21_s20 = sadd.s32 1, %s892_s20   ;;  %s1305_s15 = smov %s876_s16 }
 0x353   : > { %p18_p2 = scmp.ge.s32.totalorder %s21_s20, 4   ;;  %s1306_s16 = smov %s880_s17 }
 0x354   : > { %s1307_s17 = smov %s977_s27  ;;  %s1308_s18 = smov %s888_s19 }
 0x355   : > { %s1309_s19 = smov %s1311_s22  ;;  %20 = sbr.rel (!%p18_p2) target bundleno = 7 (0x7), region = 102 }
 0x35c   :  { %537 = vsyncpa [#allocation8], 1 }
 0x35d   :  { %539 = vsyncpa [#allocation8 + $0x1], 1 }
 0x35e   :  { %540 = vsyncpa [#allocation11], 1 }
 0x35f   :  { %542 = vsyncpa [#allocation11 + $0x1], 1 }
 0x360   :  { %543 = vsyncpa [#allocation9], 1 }
 0x361   :  { %545 = vsyncpa [#allocation9 + $0x1], 1 }

</bundles_post_ra>
